<compile_context>
chip_gen: v7x
topology: tpu7x:2x2x1
jax: 0.10.0
libtpu: 0.0.40
codegen_flags: <defaults>
</compile_context>

<pallas_src>
import jax
import jax.numpy as jnp
import numpy as np
from jax import lax
from jax.experimental import pallas as pl
from jax.experimental.pallas import tpu as pltpu

W_NEG = 1.32571275
W_POS = 0.80276873
LANES = 128
SUBLANES = 8
MAX_BLOCK_ROWS = 1024   # 1024 x 128 f32 tile = 512 KiB per input
NCORES = 2              # leading parallel axis (v7x megacore; no-op elsewhere)


def _wbce_kernel(n_ref, t_ref, o_ref, out_ref):
    i = pl.program_id(0)          # parallel (per-core) axis
    k = pl.program_id(1)          # sequential tile axis
    nk = pl.num_programs(1)
    block_rows = t_ref.shape[0]

    @pl.when(k == 0)
    def _():
        out_ref[...] = jnp.zeros_like(out_ref)

    # Validity mask derived from the true element count (no mask DMA).
    base = (i * nk + k) * (block_rows * LANES)
    row_ids = lax.broadcasted_iota(jnp.int32, (block_rows, LANES), 0)
    col_ids = lax.broadcasted_iota(jnp.int32, (block_rows, LANES), 1)
    idx = base + row_ids * LANES + col_ids
    valid = idx < n_ref[0]

    out = jnp.clip(o_ref[...].astype(jnp.float32), 1e-10, 1.0 - 1e-10)
    tgt = t_ref[...].astype(jnp.float32)
    loss = (W_POS * (tgt * jnp.log(out))
            + W_NEG * ((1.0 - tgt) * jnp.log(1.0 - out)))
    loss = jnp.where(valid, loss, 0.0)

    # Sublane-friendly partial reduce: fold the tile into one (8,128) vreg and
    # accumulate into the resident output block (VPU adds only). The full
    # cross-lane reduce happens once, in the wrapper, over 2*8*128 values.
    out_ref[...] = out_ref[...] + loss.reshape(
        block_rows // SUBLANES, SUBLANES, LANES).sum(axis=0)


def weighted_bce(target, output):
    """Pallas implementation of WeightedBCE.forward(target, output) -> scalar."""
    assert target.shape == output.shape
    n_true = int(np.prod(target.shape))

    # Keep native dtype (e.g. bf16) for the HBM->VMEM DMA; cast in-kernel.
    t_flat = jnp.ravel(target)
    o_flat = jnp.ravel(output)

    rows_needed = pl.cdiv(n_true, LANES)
    rows_per_core = pl.cdiv(rows_needed, NCORES)
    block_rows = min(MAX_BLOCK_ROWS,
                     max(SUBLANES, pl.cdiv(rows_per_core, SUBLANES) * SUBLANES))
    tiles_per_core = pl.cdiv(rows_per_core, block_rows)
    rows_padded = NCORES * tiles_per_core * block_rows

    pad = rows_padded * LANES - n_true
    # Pad values are masked out in-kernel; 0.5 keeps log() finite regardless.
    t_flat = jnp.pad(t_flat, (0, pad))
    o_flat = jnp.pad(o_flat, (0, pad), constant_values=0.5)

    t2 = t_flat.reshape(rows_padded, LANES)
    o2 = o_flat.reshape(rows_padded, LANES)
    n_arr = jnp.array([n_true], dtype=jnp.int32)

    tile_spec = pl.BlockSpec(
        (block_rows, LANES), lambda i, k, n: (i * tiles_per_core + k, 0))

    partials = pl.pallas_call(
        _wbce_kernel,
        out_shape=jax.ShapeDtypeStruct((NCORES * SUBLANES, LANES), jnp.float32),
        grid_spec=pltpu.PrefetchScalarGridSpec(
            num_scalar_prefetch=1,
            grid=(NCORES, tiles_per_core),
            in_specs=[tile_spec, tile_spec],
            out_specs=pl.BlockSpec((SUBLANES, LANES), lambda i, k, n: (i, 0)),
        ),
        compiler_params=pltpu.CompilerParams(
            dimension_semantics=("parallel", "arbitrary")),
    )(n_arr, t2, o2)

    return -(jnp.sum(partials) / jnp.float32(n_true))


def weighted_bce_ref(target, output):
    out = jnp.clip(output.astype(jnp.float32), 1e-10, 1.0 - 1e-10)
    tgt = target.astype(jnp.float32)
    loss = W_POS * (tgt * jnp.log(out)) + W_NEG * ((1.0 - tgt) * jnp.log(1.0 - out))
    return -jnp.mean(loss)


if __name__ == "__main__":
    key = jax.random.PRNGKey(0)
    k1, k2 = jax.random.split(key)
    # NCHW-shaped example, consistent with how this loss is used on sigmoid outputs.
    shape = (2, 4, 16, 16)
    target = (jax.random.uniform(k1, shape) > 0.5).astype(jnp.float32)
    output = jax.random.uniform(k2, shape, minval=0.0, maxval=1.0)

    loss = jax.block_until_ready(weighted_bce(target, output))
    ref = jax.block_until_ready(weighted_bce_ref(target, output))

    np.testing.assert_allclose(np.asarray(loss), np.asarray(ref), rtol=1e-5, atol=1e-6)
    print("KERNEL_OK")
</pallas_src>

<mosaic_0001>
module attributes {stable_mosaic.version = 11 : i64} {
  func.func @_wbce_kernel(%arg0: i32, %arg1: i32, %arg2: memref<1xi32, #tpu.memory_space<smem>>, %arg3: memref<8x128xf32, #tpu.memory_space<vmem>>, %arg4: memref<8x128xf32, #tpu.memory_space<vmem>>, %arg5: memref<8x128xf32, #tpu.memory_space<vmem>>) attributes {dimension_semantics = [#tpu.dimension_semantics<parallel>, #tpu.dimension_semantics<arbitrary>], iteration_bounds = array<i64: 2, 1>, scalar_prefetch = 1 : i64, scratch_operands = 0 : i64, tpu.core_type = #tpu.core_type<tc>, window_params = [{transform_indices = @transform_0, window_bounds = array<i64: 8, 128>}, {transform_indices = @transform_1, window_bounds = array<i64: 8, 128>}, {transform_indices = @transform_2, window_bounds = array<i64: 8, 128>}]} {
    %c0_i32 = arith.constant 0 : i32
    %0 = arith.cmpi eq, %arg1, %c0_i32 : i32
    %1 = arith.extui %0 : i1 to i32
    %c0_i32_0 = arith.constant 0 : i32
    %2 = arith.cmpi ne, %1, %c0_i32_0 : i32
    scf.if %2 {
      %cst_16 = arith.constant 0.000000e+00 : f32
      %42 = vector.broadcast %cst_16 : f32 to vector<8x128xf32>
      %c0_17 = arith.constant 0 : index
      %c0_18 = arith.constant 0 : index
      %43 = vector.load %arg5[%c0_17, %c0_18] : memref<8x128xf32, #tpu.memory_space<vmem>>, vector<8x128xf32>
      tpu.vector_store %arg5[%c0_17, %c0_18], %42 {strides = array<i32>} : memref<8x128xf32, #tpu.memory_space<vmem>>, vector<8x128xf32>,
    } else {
    }
    %c1_i32 = arith.constant 1 : i32
    %3 = arith.muli %arg0, %c1_i32 : i32
    %4 = arith.addi %3, %arg1 : i32
    %c1024_i32 = arith.constant 1024 : i32
    %5 = arith.muli %4, %c1024_i32 : i32
    %6 = tpu.iota {dimensions = array<i32: 0>} : vector<8x128xi32>
    %7 = tpu.iota {dimensions = array<i32: 1>} : vector<8x128xi32>
    %c128_i32 = arith.constant 128 : i32
    %8 = vector.broadcast %c128_i32 : i32 to vector<8x128xi32>
    %9 = arith.muli %6, %8 : vector<8x128xi32>
    %10 = vector.broadcast %5 : i32 to vector<8x128xi32>
    %11 = arith.addi %10, %9 : vector<8x128xi32>
    %12 = arith.addi %11, %7 : vector<8x128xi32>
    %c0 = arith.constant 0 : index
    %13 = memref.load %arg2[%c0] : memref<1xi32, #tpu.memory_space<smem>>
    %14 = vector.broadcast %13 : i32 to vector<8x128xi32>
    %15 = arith.cmpi slt, %12, %14 : vector<8x128xi32>
    %c0_1 = arith.constant 0 : index
    %c0_2 = arith.constant 0 : index
    %16 = vector.load %arg4[%c0_1, %c0_2] : memref<8x128xf32, #tpu.memory_space<vmem>>, vector<8x128xf32>
    %cst = arith.constant 1.000000e-10 : f32
    %cst_3 = arith.constant 1.000000e+00 : f32
    %17 = vector.broadcast %cst : f32 to vector<8x128xf32>
    %18 = arith.maximumf %17, %16 : vector<8x128xf32>
    %19 = vector.broadcast %cst_3 : f32 to vector<8x128xf32>
    %20 = arith.minimumf %19, %18 : vector<8x128xf32>
    %c0_4 = arith.constant 0 : index
    %c0_5 = arith.constant 0 : index
    %21 = vector.load %arg3[%c0_4, %c0_5] : memref<8x128xf32, #tpu.memory_space<vmem>>, vector<8x128xf32>
    %22 = math.log %20 : vector<8x128xf32>
    %23 = arith.mulf %21, %22 : vector<8x128xf32>
    %cst_6 = arith.constant 0.802768707 : f32
    %24 = vector.broadcast %cst_6 : f32 to vector<8x128xf32>
    %25 = arith.mulf %24, %23 : vector<8x128xf32>
    %cst_7 = arith.constant 1.000000e+00 : f32
    %26 = vector.broadcast %cst_7 : f32 to vector<8x128xf32>
    %27 = arith.subf %26, %21 : vector<8x128xf32>
    %cst_8 = arith.constant 1.000000e+00 : f32
    %28 = vector.broadcast %cst_8 : f32 to vector<8x128xf32>
    %29 = arith.subf %28, %20 : vector<8x128xf32>
    %30 = math.log %29 : vector<8x128xf32>
    %31 = arith.mulf %27, %30 : vector<8x128xf32>
    %cst_9 = arith.constant 1.3257128 : f32
    %32 = vector.broadcast %cst_9 : f32 to vector<8x128xf32>
    %33 = arith.mulf %32, %31 : vector<8x128xf32>
    %34 = arith.addf %25, %33 : vector<8x128xf32>
    %cst_10 = arith.constant 0.000000e+00 : f32
    %35 = vector.broadcast %cst_10 : f32 to vector<8x128xf32>
    %36 = arith.select %15, %34, %35 : vector<8x128xi1>, vector<8x128xf32>
    %c0_11 = arith.constant 0 : index
    %c0_12 = arith.constant 0 : index
    %37 = vector.load %arg5[%c0_11, %c0_12] : memref<8x128xf32, #tpu.memory_space<vmem>>, vector<8x128xf32>
    %38 = vector.shape_cast %36 : vector<8x128xf32> to vector<1x8x128xf32>
    %cst_13 = arith.constant dense<0.000000e+00> : vector<8x128xf32>
    %39 = vector.multi_reduction <add>, %38, %cst_13 [0] : vector<1x8x128xf32> to vector<8x128xf32>
    %40 = arith.addf %37, %39 : vector<8x128xf32>
    %c0_14 = arith.constant 0 : index
    %c0_15 = arith.constant 0 : index
    %41 = vector.load %arg5[%c0_14, %c0_15] : memref<8x128xf32, #tpu.memory_space<vmem>>, vector<8x128xf32>
    tpu.vector_store %arg5[%c0_14, %c0_15], %40 {strides = array<i32>} : memref<8x128xf32, #tpu.memory_space<vmem>>, vector<8x128xf32>,
    return
  }
  func.func @transform_0(%arg0: i32, %arg1: i32, %arg2: memref<1xi32, #tpu.memory_space<smem>>) -> (i32, i32) {
    %c1_i32 = arith.constant 1 : i32
    %0 = arith.muli %arg0, %c1_i32 : i32
    %1 = arith.addi %0, %arg1 : i32
    %c0_i32 = arith.constant 0 : i32
    %c0_i32_0 = arith.constant 0 : i32
    return %1, %c0_i32 : i32, i32
  }
  func.func @transform_1(%arg0: i32, %arg1: i32, %arg2: memref<1xi32, #tpu.memory_space<smem>>) -> (i32, i32) {
    %c1_i32 = arith.constant 1 : i32
    %0 = arith.muli %arg0, %c1_i32 : i32
    %1 = arith.addi %0, %arg1 : i32
    %c0_i32 = arith.constant 0 : i32
    %c0_i32_0 = arith.constant 0 : i32
    return %1, %c0_i32 : i32, i32
  }
  func.func @transform_2(%arg0: i32, %arg1: i32, %arg2: memref<1xi32, #tpu.memory_space<smem>>) -> (i32, i32) {
    %c0_i32 = arith.constant 0 : i32
    %c0_i32_0 = arith.constant 0 : i32
    return %arg0, %c0_i32 : i32, i32
  }
}

</mosaic_0001>

<bundles_post_ra>
// kernel: tpu_custom_call.1
= control target key start
LH: loop header
LB: loop body
LE: loop exit
PB: predicated region body
PF: predicated region fallthrough
CT: control target
= control target key end

     0   :  { %s862_s0 = inlined_call_operand.<no memory space> [shape: s32[1], index: 0, kind: input, shape index: {}]   ;;  %s863_s1 = inlined_call_operand.hbm [shape: f32[16,128], index: 1, kind: input, shape index: {}]   ;;  %s864_s2 = inlined_call_operand.hbm [shape: f32[16,128], index: 2, kind: input, shape index: {}]   ;;  %s865_s3 = inlined_call_operand.hbm [shape: f32[16,128], index: 3, kind: output, shape index: {}]  }
   0x1   :  { %8 = sst [smem:[#allocation3]] %s862_s0 }
   0x2   :  { %9 = vsyncpa [#allocation5], 0 }
   0x3   :  { %11 = vsyncpa [#allocation5 + $0x1], 0 }
   0x4   :  { %12 = vsyncpa [#allocation8], 0 }
   0x5   :  { %14 = vsyncpa [#allocation8 + $0x1], 0 }
   0x6   :  { %15 = vsyncpa [#allocation6], 0 }
   0x7   :  { %17 = vsyncpa [#allocation6 + $0x1], 0  ;;  %s636_s14 = smov 0   ;;  %s638_s15 = smov 0  }
   0x8   :  { %s640_s16 = smov 0   ;;  %s642_s17 = smov 0  }
   0x9   :  { %s644_s18 = smov 0   ;;  %s646_s19 = smov 0  }
   0xa LB: > { %s373_s0 = sadd.s32 4294967295, %s608_s19   ;;  %s374_s20 = sadd.s32 4294967294, %s608_s19   ;;  %s608_s19 = sphi %s646_s19, %s23_s19   ;;  %s604_s18 = sphi %s644_s18, %s885_s18   ;;  %s600_s17 = sphi %s642_s17, %s884_s17   ;;  %s596_s16 = sphi %s640_s16, %s883_s16   ;;  %s592_s15 = sphi %s638_s15, %s882_s15   ;;  %s588_s14 = sphi %s636_s14, %s881_s14  }
   0xb   : > { %s35_s21 = sadd.s32 1, %s604_s18  ;;  %s44_s22 = sadd.s32 1, %s596_s16 }
   0xc   : > { %p37_p0 = scmp.ge.s32.totalorder %s35_s21, 2  ;;  %p51_p1 = scmp.ne.s32.totalorder %s596_s16, %s592_s15 }
   0xd   : > { %p52_p2 = scmp.eq.s32.totalorder %s608_s19, 0  ;;  %p57_p3 = scmp.ne.s32.totalorder %s592_s15, %s588_s14 }
   0xe   : > { %s887_s21 = smov (%p37_p0, %s35_s21), 0  ;;  %p58_p5 = scmp.eq.s32.totalorder %s373_s0, 0 }
   0xf   : > { %p677_p4 = por %p52_p2, %p51_p1  ;;  %s41_s24 = ssub.s32 %s604_s18, %s887_s21 }
  0x10   : > { %p109_p6 = scmp.eq.s32.totalorder %s373_s0, 1  ;;  %p42_p7 = scmp.eq.s32.totalorder %s41_s24, 0 }
  0x11   : > { %p683_p8 = por %p58_p5, %p57_p3  ;;  %p115_p10 = scmp.eq.s32.totalorder %s374_s20, 1 }
  0x12   : > { %p687_p9 = por %p109_p6, %p51_p1  ;;  %p407_p13 = scmp.lt.s32.totalorder %s608_s19, 2 }
  0x13   : > { %s869_s25 = scalar_select %p683_p8, 1, 0 }
  0x14   : > { %s870_s26 = scalar_select %p687_p9, 1, 0 }
  0x15   : > { %s692_s27 = scalar_select %p42_p7, %s596_s16, %s44_s22  }
  0x16   : > { %p694_p11 = por %p115_p10, %p57_p3  ;;  %s701_s29 = sand.u32 1, %s596_s16  }
  0x17   : > { %s377_s30 = sshll.u32 %s701_s29, 3  ;;  %s378_s4 = sshll.u32 %s604_s18, 7 }
  0x18   : > { %s871_s28 = scalar_select %p694_p11, 1, 0 }
  0x19   : > { %s710_s7 = scalar_lea.hbm %s863_s1, %s378_s4  ;;  %s139_s8 = scalar_lea.vmem [#allocation4], %s377_s30 }
  0x1a   : > { %s147_s9 = sshll.u32 %s139_s8, 4  ;;  %p718_p0 = pnand %p407_p13, %p677_p4  ;;  %s714_s9 = int_to_ptr.vmem [resolvable:$true] %s147_s9 }
  0x1b   : > { %s136_s11 = scalar_lea.sflag [#allocation5], %s701_s29  ;;  %s462_s12 = scalar_lea.hbm %s710_s7, 128 }
  0x1c   : > { %p463_p3 = scmp.ne.s32.totalorder %s710_s7, %s462_s12  ;;  %p464_p5 = pneg %p718_p0 }
  0x1d   : > { %s467_s20 = scalar_lea.hbm %s863_s1, 256  ;;  %p468_p4 = scmp.lt.u32.totalorder %s710_s7, %s863_s1 }
  0x1e   : > { %p465_p6 = pnand %p464_p5, %p463_p3  ;;  %p469_p10 = scmp.lt.u32.totalorder %s467_s20, %s462_s12 }
  0x1f   : > { %p471_p12 = scmp.lt.u32.totalorder %s462_s12, %s710_s7 }
  0x20   : > { %p466_p7 = pneg %p465_p6  ;;  %p470_p13 = por %p469_p10, %p468_p4 }
  0x22   : > { %p472_p1 = por %p471_p12, %p470_p13 }
  0x24   : > { %p473_p2 = pnand %p472_p1, %p466_p7 }
  0x26   : > { %476 = shalt.err (!%p473_p2)
}
  0x27   : > { %s477_s24 = scalar_lea.vmem %s714_s9, 128  ;;  %s610_s5 = smov [#allocation4]  }
  0x28   : > { %p478_p3 = scmp.ne.s32.totalorder %s714_s9, %s477_s24  ;;  %s482_s6 = sshll.u32 %s610_s5, 4  ;;  %s483_s6 = int_to_ptr.vmem [resolvable:$false] %s482_s6 }
  0x29   : > { %s484_s8 = scalar_lea.vmem %s483_s6, 256  ;;  %p485_p9 = scmp.lt.s32.totalorder %s714_s9, %s483_s6 }
  0x2a   : > { %p480_p6 = pnand %p478_p3, %p464_p5  ;;  %p486_p4 = scmp.lt.s32.totalorder %s484_s8, %s477_s24 }
  0x2c   : > { %p481_p11 = pneg %p480_p6  ;;  %p487_p10 = por %p486_p4, %p485_p9 }
  0x2e   : > { %p488_p12 = pnand %p487_p10, %p481_p11 }
  0x30   : > { %491 = shalt.err (!%p488_p12)
}
  0x31   : > { %399 = dma.hbm_to_vmem [thread:$0]  (!%p718_p0), %s710_s7, 128, %s714_s9, %s136_s11  }
  0x32   : > { %p873_p1 = scmp.lt.s32.totalorder %s608_s19, 3  ;;  %p874_p2 = scmp.ge.s32.totalorder %s608_s19, 1 }
  0x33   : > { %s763_s20 = scalar_lea.hbm %s864_s2, %s378_s4  ;;  %s158_s22 = scalar_lea.vmem [#allocation7], %s377_s30 }
  0x34   : > { %p754_p7 = pnand %p874_p2, %p873_p1  ;;  %s166_s23 = sshll.u32 %s158_s22, 4  ;;  %s167_s23 = int_to_ptr.vmem [resolvable:$true] %s166_s23 }
  0x35   : > { %s155_s7 = scalar_lea.sflag [#allocation8], %s701_s29  ;;  %s492_s9 = scalar_lea.hbm %s763_s20, 128 }
  0x36   : > { %s875_s12 = scalar_select %p754_p7, 1, 0 }
  0x37   : > { %p493_p9 = scmp.ne.s32.totalorder %s763_s20, %s492_s9  ;;  %s497_s4 = scalar_lea.hbm %s864_s2, 256 }
  0x38   : > { %p498_p3 = scmp.lt.u32.totalorder %s763_s20, %s864_s2  ;;  %p499_p6 = scmp.lt.u32.totalorder %s497_s4, %s492_s9 }
  0x39   : > { %p495_p11 = pnand %p493_p9, %p464_p5  ;;  %p501_p10 = scmp.lt.u32.totalorder %s492_s9, %s763_s20 }
  0x3a   : > { %p500_p4 = por %p499_p6, %p498_p3 }
  0x3b   : > { %p496_p13 = pneg %p495_p11 }
  0x3c   : > { %p502_p12 = por %p501_p10, %p500_p4 }
  0x3e   : > { %p503_p1 = pnand %p502_p12, %p496_p13 }
  0x40   : > { %506 = shalt.err (!%p503_p1)
}
  0x41   : > { %s507_s29 = scalar_lea.vmem %s167_s23, 128  ;;  %s611_s30 = smov [#allocation7]  }
  0x42   : > { %p508_p2 = scmp.ne.s32.totalorder %s167_s23, %s507_s29  ;;  %s512_s8 = sshll.u32 %s611_s30, 4  ;;  %s513_s8 = int_to_ptr.vmem [resolvable:$false] %s512_s8 }
  0x43   : > { %s514_s13 = scalar_lea.vmem %s513_s8, 256  ;;  %p515_p8 = scmp.lt.s32.totalorder %s167_s23, %s513_s8 }
  0x44   : > { %p510_p9 = pnand %p508_p2, %p464_p5  ;;  %p516_p7 = scmp.lt.s32.totalorder %s514_s13, %s507_s29 }
  0x46   : > { %p511_p11 = pneg %p510_p9  ;;  %p517_p3 = por %p516_p7, %p515_p8 }
  0x48   : > { %p518_p6 = pnand %p517_p3, %p511_p11 }
  0x4a   : > { %521 = shalt.err (!%p518_p6)
}
  0x4b   : > { %402 = dma.hbm_to_vmem [thread:$0]  (!%p718_p0), %s763_s20, 128, %s167_s23, %s155_s7  }
  0x4c   : > { %p876_p13 = scmp.ne.s32.totalorder %s875_s12, 0 }
  0x4d   : > { %s790_s0 = sand.u32 (!%p876_p13), 1, %s592_s15   ;;  %p877_p8 = scmp.ne.s32.totalorder (!%p876_p13), %s869_s25, 0 }
  0x4e   : > { %175 = sbr.rel (%p876_p13) target bundleno = 129 (0x81), region = 28  ;;  %s793_s22 = sshll.u32 (!%p876_p13), %s790_s0, 3 }
  0x4f   : > { %s178_s9 = scalar_lea.sflag (!%p876_p13), [#allocation5], %s790_s0  ;;  %s181_s11 = scalar_lea.vmem (!%p876_p13), [#allocation4], %s793_s22 }
  0x55   : > { %575 = dma.done.wait (%p877_p8), %s178_s9, 128  }
  0x56   : > { %577 = vsyncadd (%p877_p8), %s178_s9, 4294967168  ;;  %s187_s10 = scalar_lea.sflag [#allocation8], %s790_s0  ;;  %s190_s12 = scalar_lea.vmem [#allocation7], %s793_s22 }
  0x57   : > { %579 = dma.done.wait (%p877_p8), %s187_s10, 128  }
  0x58   : > { %581 = vsyncadd (%p877_p8), %s187_s10, 4294967168  ;;  %v236_v0 = vld [vmem:[%s190_s12] sm:$0xff]  ;;  %v225_v2 = vlaneseq  ;;  %s385_s20 = sshll.u32 %s600_s17, 10  ;;  %s233_s23 = sld [smem:[#allocation3]]  ;;  %v239_v8 = vld [vmem:[%s181_s11] sm:$0xff] }
  0x59   : > { %v237_v1 = vmax.f32 %v236_v0, 1e-10  ;;  %v230_v7 = vstv %s385_s20  ;;  %v244_v13 = vsub.f32 1.0, %v239_v8  ;;  %s387_s25 = sshll.u32 %s600_s17, 7  ;;  %s215_s7 = scalar_lea.vmem [#allocation9], %s793_s22 }
  0x5a   : > { %v226_v5 = vshrl.u32 %v225_v2, 7  ;;  %v228_v10 = vand.u32 127, %v225_v2  ;;  %s270_s24 = sshll.u32 %s215_s7, 4  ;;  %s813_s6 = scalar_lea.hbm %s865_s3, %s387_s25  ;;  %s815_s24 = int_to_ptr.vmem [resolvable:$true] %s270_s24 }
  0x5b   : > { %v238_v3 = vmin.f32 %v237_v1, 1.0  ;;  %s257_s29 = scalar_lea.sflag [#allocation6], %s790_s0  ;;  %s522_s30 = scalar_lea.vmem %s815_s24, 128 }
  0x5c   : > { %v229_v6 = vmul.u32 128, %v226_v5  ;;  %p523_p0 = scmp.ne.s32.totalorder %s815_s24, %s522_s30  ;;  %p878_p5 = scmp.ne.s32.totalorder %s870_s26, 0 }
  0x5d   : > { %458 = vlog2.f32 %v238_v3  ;;  %v245_v4 = vsub.f32 1.0, %v238_v3  ;;  %s612_s17 = smov [#allocation9]  }
  0x5e   : > { %v231_v11 = vadd.s32 %v230_v7, %v229_v6  ;;  %v234_v18 = vstv %s233_s23  ;;  %p524_p7 = pnand %p523_p0, %p878_p5  ;;  %s526_s8 = sshll.u32 %s612_s17, 4  ;;  %s527_s8 = int_to_ptr.vmem [resolvable:$false] %s526_s8 }
  0x5f   : > { %460 = vlog2.f32 %v245_v4  ;;  %s528_s13 = scalar_lea.vmem %s527_s8, 256  ;;  %p529_p10 = scmp.lt.s32.totalorder %s815_s24, %s527_s8 }
  0x60   : > { %v232_v17 = vadd.s32 %v231_v11, %v228_v10  ;;  %p525_p4 = pneg %p524_p7  ;;  %p530_p12 = scmp.lt.s32.totalorder %s528_s13, %s522_s30 }
  0x62   : > { %vm235_vm0 = vcmp.lt.s32.totalorder %v232_v17, %v234_v18  ;;  %p531_p1 = por %p530_p12, %p529_p10 }
  0x64   : > { %p532_p2 = pnand %p531_p1, %p525_p4 }
  0x67   : > { %v459_v9 = vpop.eup %458 }
  0x68   : > { %v241_v12 = vmul.f32 0.6931472, %v459_v9 }
  0x69   : > { %v461_v14 = vpop.eup %460 }
  0x6a   : > { %v242_v15 = vmul.f32 %v241_v12, %v239_v8  ;;  %v247_v16 = vmul.f32 0.6931472, %v461_v14 }
  0x6c   : > { %v243_v19 = vmul.f32 0.8027687, %v242_v15  ;;  %v248_v20 = vmul.f32 %v247_v16, %v244_v13 }
  0x6e   : > { %v249_v21 = vmul.f32 1.3257128, %v248_v20 }
  0x70   : > { %v250_v22 = vadd.f32 %v249_v21, %v243_v19 }
  0x72   : > { %v251_v23 = vsel %vm235_vm0, %v250_v22, 0.0 }
  0x73   : > { %255 = vst [vmem:[%s215_s7] sm:$0xff] %v251_v23 }
  0x74   : > { %535 = shalt.err (!%p532_p2)
}
  0x75   : > { %s536_s0 = scalar_lea.hbm %s813_s6, 128  ;;  %s540_s11 = scalar_lea.hbm %s865_s3, 256 }
  0x76   : > { %p537_p9 = scmp.ne.s32.totalorder %s813_s6, %s536_s0  ;;  %p541_p6 = scmp.lt.u32.totalorder %s813_s6, %s865_s3 }
  0x77   : > { %p542_p13 = scmp.lt.u32.totalorder %s540_s11, %s536_s0  ;;  %p544_p0 = scmp.lt.u32.totalorder %s536_s0, %s813_s6 }
  0x78   : > { %p538_p11 = pnand %p537_p9, %p878_p5 }
  0x79   : > { %p543_p8 = por %p542_p13, %p541_p6 }
  0x7a   : > { %p539_p3 = pneg %p538_p11 }
  0x7b   : > { %p545_p7 = por %p544_p0, %p543_p8 }
  0x7d   : > { %p546_p4 = pnand %p545_p7, %p539_p3 }
  0x7f   : > { %549 = shalt.err (!%p546_p4)
}
  0x80   : > { %394 = dma.vmem_to_hbm [thread:$0]  (%p878_p5), %s815_s24, 128, %s813_s6, %s257_s29  }
  0x81 PF: > { %s282_s20 = sand.u32 1, %s588_s14   ;;  %p879_p10 = scmp.ne.s32.totalorder %s871_s28, 0 }
  0x82   : > { %p880_p12 = scmp.ge.s32.totalorder %s608_s19, 2  ;;  %s283_s23 = scalar_lea.sflag [#allocation6], %s282_s20 }
  0x84   : > { %p404_p1 = pnand %p880_p12, %p879_p10 }
  0x86   : > { %583 = dma.done.wait (!%p404_p1), %s283_s23, 128  }
  0x87   : > { %585 = vsyncadd (!%p404_p1), %s283_s23, 4294967168  ;;  %s23_s19 = sadd.s32 1, %s608_s19   ;;  %s881_s14 = smov %s592_s15 }
  0x88   : > { %p20_p2 = scmp.ge.s32.totalorder %s23_s19, 4   ;;  %s882_s15 = smov %s596_s16 }
  0x89   : > { %s883_s16 = smov %s692_s27  ;;  %s884_s17 = smov %s604_s18 }
  0x8a   : > { %s885_s18 = smov %s887_s21  ;;  %22 = sbr.rel (!%p20_p2) target bundleno = 10 (0xa), region = 90 }
  0x91   :  { %288 = vsyncpa [#allocation5], 1 }
  0x92   :  { %290 = vsyncpa [#allocation5 + $0x1], 1 }
  0x93   :  { %291 = vsyncpa [#allocation8], 1 }
  0x94   :  { %293 = vsyncpa [#allocation8 + $0x1], 1 }
  0x95   :  { %294 = vsyncpa [#allocation6], 1 }
  0x96   :  { %296 = vsyncpa [#allocation6 + $0x1], 1 }

</bundles_post_ra>
